<compile_context>
chip_gen: v6e
topology: v6e:2x2x1
jax: 0.10.0
libtpu: 0.0.40
codegen_flags: <defaults>
</compile_context>

<pallas_src>
import jax
import jax.numpy as jnp
from jax.experimental import pallas as pl
from jax.experimental.pallas import tpu as pltpu


def _scalar_encoder_kernel(x_ref, p1_ref, p2_ref, o_ref):
    """One batch tile of the ScalarEncoder, transposed layout (features on sublanes,
    batch on lanes).

      x_ref : (1, TB)         -- scalar input per row, batch on lanes
      p1_ref: (H//2, 2)       -- col 0 = W1 row (Linear(1, H//2) weight), col 1 = b1
      p2_ref: (H, H//2 + 1)   -- cols [0:H//2] = W2^T, last col = b2
      o_ref : (H, TB)
    """
    hh = p1_ref.shape[0]                      # H // 2 (static)

    xT = x_ref[...]                           # (1, TB)
    p1 = p1_ref[...]                          # (hh, 2)
    p2 = p2_ref[...]                          # (H, hh + 1)

    w1 = p1[:, 0:1]                           # (hh, 1)
    b1 = p1[:, 1:2]                           # (hh, 1)
    w2t = p2[:, :hh]                          # (H, hh)
    b2 = p2[:, hh:hh + 1]                     # (H, 1)

    # Layer 1: Linear(1, H//2) + ReLU  ==  broadcast mul-add (fan_in == 1), lane-dense.
    h = jnp.maximum(w1 * xT + b1, 0.0)        # (hh, TB)

    # Layer 2: Linear(H//2, H), computed transposed so the output stays lane-dense.
    y = jnp.dot(w2t, h, preferred_element_type=jnp.float32) + b2   # (H, TB)

    o_ref[...] = y.astype(o_ref.dtype)


def scalar_encoder(x, params, *, block_b=256):
    """ScalarEncoder forward.

    x: (B, 1) float32.
    params: [(W1, b1), (W2, b2)] with W stored as (in_features, out_features).
    Returns (B, hidden_size) float32.
    """
    (w1, b1), (w2, b2) = params
    hh = w1.shape[1]            # hidden_size // 2
    hid = w2.shape[1]           # hidden_size
    batch = x.shape[0]

    # Pack parameters into two VMEM-resident slabs.
    p1 = jnp.stack([w1.reshape(hh), b1.reshape(hh)], axis=1)              # (hh, 2)
    p2 = jnp.concatenate([w2.T, b2.reshape(hid, 1)], axis=1)              # (hid, hh+1)

    # Transpose x so batch lies on the lane axis; pad batch to a multiple of block_b.
    bpad = pl.cdiv(batch, block_b) * block_b
    xT = jnp.zeros((1, bpad), x.dtype).at[0, :batch].set(x.reshape(batch))
    nb = bpad // block_b

    outT = pl.pallas_call(
        _scalar_encoder_kernel,
        out_shape=jax.ShapeDtypeStruct((hid, bpad), jnp.float32),
        grid=(nb,),
        in_specs=[
            pl.BlockSpec((1, block_b), lambda i: (0, i)),      # x tile, batch on lanes
            pl.BlockSpec(p1.shape, lambda i: (0, 0)),          # resident across grid
            pl.BlockSpec(p2.shape, lambda i: (0, 0)),          # resident across grid
        ],
        out_specs=pl.BlockSpec((hid, block_b), lambda i: (0, i)),
        compiler_params=pltpu.CompilerParams(
            dimension_semantics=("parallel",)),
    )(xT, p1, p2)

    # Back to (B, hidden_size); wrapper-side layout plumbing only.
    return outT[:, :batch].T


def init_params(key, hidden_size):
    """PyTorch-Linear-style init (uniform +-1/sqrt(fan_in)); W stored as (in, out)."""
    dims = [(1, hidden_size // 2), (hidden_size // 2, hidden_size)]
    params = []
    for fan_in, fan_out in dims:
        key, kw, kb = jax.random.split(key, 3)
        bound = 1.0 / jnp.sqrt(fan_in)
        w = jax.random.uniform(kw, (fan_in, fan_out), jnp.float32, -bound, bound)
        b = jax.random.uniform(kb, (fan_out,), jnp.float32, -bound, bound)
        params.append((w, b))
    return params


def reference_scalar_encoder(x, params):
    """Pure-JAX reference (Linear -> ReLU -> Linear)."""
    (w1, b1), (w2, b2) = params
    # fan_in == 1, so x @ w1 == x * w1 exactly (avoids MXU rounding in the check).
    h = jnp.maximum(x * w1.reshape(1, -1) + b1.reshape(1, -1), 0.0)
    return h @ w2 + b2.reshape(1, -1)


if __name__ == "__main__":
    hidden_size = 32
    batch = 500          # deliberately not a multiple of the tile to exercise padding

    key = jax.random.PRNGKey(0)
    key, kx = jax.random.split(key)
    x = jax.random.normal(kx, (batch, 1), jnp.float32)

    params = init_params(key, hidden_size)

    out = scalar_encoder(x, params)
    out = jax.block_until_ready(out)

    ref = reference_scalar_encoder(x, params)
    assert out.shape == (batch, hidden_size)
    assert jnp.allclose(out, ref, atol=1e-4, rtol=1e-4), "Pallas output mismatch vs reference"

    print("KERNEL_OK")
</pallas_src>

<mosaic_0001>
module attributes {stable_mosaic.version = 11 : i64} {
  func.func @_scalar_encoder_kernel(%arg0: i32, %arg1: memref<1x256xf32, #tpu.memory_space<vmem>>, %arg2: memref<16x2xf32, #tpu.memory_space<vmem>>, %arg3: memref<32x17xf32, #tpu.memory_space<vmem>>, %arg4: memref<32x256xf32, #tpu.memory_space<vmem>>) attributes {dimension_semantics = [#tpu.dimension_semantics<parallel>], iteration_bounds = array<i64: 2>, scalar_prefetch = 0 : i64, scratch_operands = 0 : i64, tpu.core_type = #tpu.core_type<tc>, window_params = [{transform_indices = @transform_0, window_bounds = array<i64: 1, 256>}, {pipeline_mode = #tpu.pipeline_mode<synchronous>, transform_indices = @transform_1, window_bounds = array<i64: 16, 2>}, {pipeline_mode = #tpu.pipeline_mode<synchronous>, transform_indices = @transform_2, window_bounds = array<i64: 32, 17>}, {transform_indices = @transform_3, window_bounds = array<i64: 32, 256>}]} {
    %c0 = arith.constant 0 : index
    %c0_0 = arith.constant 0 : index
    %0 = vector.load %arg1[%c0, %c0_0] : memref<1x256xf32, #tpu.memory_space<vmem>>, vector<1x256xf32>
    %c0_1 = arith.constant 0 : index
    %c0_2 = arith.constant 0 : index
    %1 = vector.load %arg2[%c0_1, %c0_2] : memref<16x2xf32, #tpu.memory_space<vmem>>, vector<16x2xf32>
    %c0_3 = arith.constant 0 : index
    %c0_4 = arith.constant 0 : index
    %2 = vector.load %arg3[%c0_3, %c0_4] : memref<32x17xf32, #tpu.memory_space<vmem>>, vector<32x17xf32>
    %3 = vector.extract_strided_slice %1 {offsets = [0, 0], sizes = [16, 1], strides = [1, 1]} : vector<16x2xf32> to vector<16x1xf32>
    %4 = vector.extract_strided_slice %1 {offsets = [0, 1], sizes = [16, 1], strides = [1, 1]} : vector<16x2xf32> to vector<16x1xf32>
    %5 = vector.extract_strided_slice %2 {offsets = [0, 0], sizes = [32, 16], strides = [1, 1]} : vector<32x17xf32> to vector<32x16xf32>
    %6 = vector.extract_strided_slice %2 {offsets = [0, 16], sizes = [32, 1], strides = [1, 1]} : vector<32x17xf32> to vector<32x1xf32>
    %7 = vector.broadcast %3 : vector<16x1xf32> to vector<16x256xf32>
    %8 = vector.broadcast %0 : vector<1x256xf32> to vector<16x256xf32>
    %9 = arith.mulf %7, %8 : vector<16x256xf32>
    %10 = vector.broadcast %4 : vector<16x1xf32> to vector<16x256xf32>
    %11 = arith.addf %9, %10 : vector<16x256xf32>
    %cst = arith.constant 0.000000e+00 : f32
    %12 = vector.broadcast %cst : f32 to vector<16x256xf32>
    %13 = arith.maximumf %11, %12 : vector<16x256xf32>
    %cst_5 = arith.constant dense<0.000000e+00> : vector<32x256xf32>
    %14 = tpu.matmul %5, %13, %cst_5 {dimension_numbers = #tpu.dot_dimension_numbers<[1], [0], [0], [1], [0, 0, 1, 1], [], []>} : vector<32x16xf32>, vector<16x256xf32>, vector<32x256xf32> -> vector<32x256xf32>
    %15 = vector.broadcast %6 : vector<32x1xf32> to vector<32x256xf32>
    %16 = arith.addf %14, %15 : vector<32x256xf32>
    %c0_6 = arith.constant 0 : index
    %c0_7 = arith.constant 0 : index
    %17 = vector.load %arg4[%c0_6, %c0_7] : memref<32x256xf32, #tpu.memory_space<vmem>>, vector<32x256xf32>
    tpu.vector_store %arg4[%c0_6, %c0_7], %16 {strides = array<i32>} : memref<32x256xf32, #tpu.memory_space<vmem>>, vector<32x256xf32>,
    return
  }
  func.func @transform_0(%arg0: i32) -> (i32, i32) {
    %c0_i32 = arith.constant 0 : i32
    %c0_i32_0 = arith.constant 0 : i32
    return %c0_i32, %arg0 : i32, i32
  }
  func.func @transform_1(%arg0: i32) -> (i32, i32) {
    %c0_i32 = arith.constant 0 : i32
    %c0_i32_0 = arith.constant 0 : i32
    %c0_i32_1 = arith.constant 0 : i32
    return %c0_i32, %c0_i32_0 : i32, i32
  }
  func.func @transform_2(%arg0: i32) -> (i32, i32) {
    %c0_i32 = arith.constant 0 : i32
    %c0_i32_0 = arith.constant 0 : i32
    %c0_i32_1 = arith.constant 0 : i32
    return %c0_i32, %c0_i32_0 : i32, i32
  }
  func.func @transform_3(%arg0: i32) -> (i32, i32) {
    %c0_i32 = arith.constant 0 : i32
    %c0_i32_0 = arith.constant 0 : i32
    return %c0_i32, %arg0 : i32, i32
  }
}

</mosaic_0001>

<bundles_post_ra>
// kernel: tpu_custom_call.1
= control target key start
LH: loop header
LB: loop body
LE: loop exit
PB: predicated region body
PF: predicated region fallthrough
CT: control target
= control target key end

     0   :  { %8 = vsyncpa [#allocation3], 0  ;;  %s699_s0 = inlined_call_operand.vmem [shape: f32[1,512], index: 0, kind: input, shape index: {}]   ;;  %s700_s1 = inlined_call_operand.vmem [shape: f32[16,2], index: 1, kind: input, shape index: {}]   ;;  %s701_s2 = inlined_call_operand.vmem [shape: f32[32,17], index: 2, kind: input, shape index: {}]   ;;  %s702_s3 = inlined_call_operand.hbm [shape: f32[32,512], index: 3, kind: output, shape index: {}]  }
   0x1   :  { %10 = vsyncpa [#allocation3 + $0x1], 0  ;;  %s576_s12 = smov 0   ;;  %s578_s13 = smov 0  }
   0x2   :  { %s580_s14 = smov 0   ;;  %s582_s15 = smov 0  }
   0x3 LB: > { %s597_s16 = sadd.s32 4294967295, %s546_s15   ;;  %s416_s17 = sadd.s32 4294967294, %s546_s15   ;;  %s546_s15 = sphi %s582_s15, %s708_s15   ;;  %s542_s14 = sphi %s580_s14, %s707_s14   ;;  %s538_s13 = sphi %s578_s13, %s706_s13   ;;  %s534_s12 = sphi %s576_s12, %s705_s12  }
   0x4   : > { %s601_s18 = sadd.s32 1, %s546_s15   ;;  %s91_s19 = sadd.s32 1, %s542_s14 }
   0x5   : > { %s88_s20 = ssub.s32 %s546_s15, %s601_s18  ;;  %p101_p0 = scmp.ne.s32.totalorder %s542_s14, %s538_s13 }
   0x6   : > { %p89_p1 = scmp.eq.s32.totalorder %s88_s20, 0  ;;  %p102_p2 = scmp.eq.s32.totalorder %s597_s16, 1 }
   0x7   : > { %p107_p3 = scmp.ne.s32.totalorder %s538_s13, %s534_s12  ;;  %p108_p4 = scmp.eq.s32.totalorder %s416_s17, 1 }
   0x8   : > { %s612_s21 = scalar_select %p89_p1, %s542_s14, %s91_s19  }
   0x9   : > { %p614_p5 = por %p102_p2, %p101_p0  ;;  %p618_p6 = por %p108_p4, %p107_p3 }
   0xa   : > { %p419_p7 = scmp.ge.s32.totalorder %s546_s15, 1  ;;  %p140_p8 = scmp.lt.s32.totalorder %s546_s15, 3 }
   0xc   : > { %p141_p9 = pnand %p419_p7, %p140_p8 }
   0xd   : > { %s421_s9 = sshll.u32 (!%p141_p9), %s597_s16, 1  ;;  %s160_s19 = sand.u32 (!%p141_p9), 1, %s538_s13  }
   0xe   : > { %144 = sbr.rel (%p141_p9) target bundleno = 373 (0x175), region = 32  ;;  %p164_p10 = scmp.lt.s32.totalorder (!%p141_p9), %s421_s9, 3 }
   0xf   : > { %s420_s20 = sshll.u32 (!%p141_p9), %s160_s19, 6  ;;  %s431_s26 = sshll.u32 (!%p141_p9), %s597_s16, 8 }
  0x10   : > { %s162_s24 = scalar_lea.vmem (!%p141_p9), [#allocation2], %s420_s20  ;;  %s655_s29 = scalar_lea.hbm (!%p141_p9), %s702_s3, %s431_s26 }
  0x11   : > { %s357_s25 = sshll.u32 (!%p141_p9), %s162_s24, 4  ;;  %s659_s16 = scalar_lea.sflag (!%p141_p9), [#allocation3], %s160_s19  ;;  %s650_s25 = int_to_ptr.vmem [resolvable:$true] %s357_s25 }
  0x12   : > { %s486_s30 = scalar_lea.vmem (!%p141_p9), %s650_s25, 1024  ;;  %s552_s4 = smov (!%p141_p9), [#allocation2]  }
  0x13   : > { %v171_v0 = vld [vmem:[%s700_s1 + $0x8] sm:$0xff]  ;;  %v548_v1 = vmov 1   ;;  %v549_v2 = vmov 0   ;;  %v170_v3 = vld [vmem:[%s700_s1] sm:$0xff]  ;;  %v550_v4 = vmov 0.0   ;;  %v551_v7 = vmov 16   ;;  %p487_p11 = scmp.ne.s32.totalorder %s650_s25, %s486_s30 }
  0x14   : > { %483 = vset.pattern.permute.xlu1 %v548_v1  ;;  %482 = vset.pattern.permute.xlu0 %v549_v2  ;;  %v172_v5 = vld [vmem:[%s701_s2] sm:$0xff]  ;;  %v173_v6 = vld [vmem:[%s701_s2 + $0x8] sm:$0xff]  ;;  %v174_v8 = vld [vmem:[%s701_s2 + $0x10] sm:$0xff]  ;;  %v187_v10 = vlaneseq  ;;  %s710_s9 = smov (!%p164_p10, %s421_s9), 3  ;;  %vm237_vm0 = vcmask 130048   ;;  %s490_s5 = sshll.u32 %s552_s4, 4  ;;  %s491_s5 = int_to_ptr.vmem [resolvable:$false] %s490_s5 }
  0x15   : > { %206 = vperm.xlu1 %483, %v171_v0   ;;  %183 = vperm.xlu0 %482, %v171_v0   ;;  %v175_v9 = vld [vmem:[%s701_s2 + $0x18] sm:$0xff]  ;;  %s166_s17 = scalar_lea.vmem %s699_s0, %s710_s9  ;;  %p488_p12 = pnand %p487_p11, %p614_p5 }
  0x16   : > { %310 = vmatprep.mubr.f32.mxu0 %v550_v4  ;;  %322 = vmatprep.mubr.f32.mxu1 %v550_v4  ;;  %v188_v11 = vshrl.u32 %v187_v10, 7  ;;  %v169_v14 = vld [vmem:[%s166_s17] sm:$0x3]  ;;  %s492_s6 = scalar_lea.vmem %s491_s5, 2048  ;;  %p493_p0 = scmp.lt.s32.totalorder %s650_s25, %s491_s5 }
  0x17   : > { %p489_p13 = pneg %p488_p12  ;;  %p494_p1 = scmp.lt.s32.totalorder %s492_s6, %s486_s30 }
  0x18   : > { %v189_v12 = vsub.s32 0, %v188_v11  ;;  %v193_v13 = vsub.s32 1, %v188_v11 }
  0x19   : > { %202 = vperm.xlu1 %483, %v170_v3   ;;  %178 = vperm.xlu0 %482, %v170_v3   ;;  %p495_p2 = por %p494_p1, %p493_p0 }
  0x1a   : > { %v190_v15 = vrot.slane %v169_v14, %v189_v12  ;;  %v194_v16 = vrot.slane %v169_v14, %v193_v13 }
  0x1b   : > { %p496_p3 = pnand %p495_p2, %p489_p13 }
  0x1d   : > { %485 = vset.pattern.permute.xlu1 %v551_v7  ;;  %484 = vset.pattern.permute.xlu0 %v551_v7 }
  0x1e   : > { %224 = vperm.xlu1 %485, %v173_v6   ;;  %219 = vperm.xlu0 %484, %v172_v5  }
  0x22   : > { %229 = vperm.xlu1 %485, %v174_v8   ;;  %234 = vperm.xlu0 %484, %v175_v9  }
  0x90   : > { %v207_v17 = vpop.permute.xlu1 %206  ;;  %v184_v18 = vpop.permute.xlu0 %183 }
  0x91   : > { %v199_v19 = vmul.f32 %v190_v15, %v184_v18  ;;  %v200_v20 = vmul.f32 %v194_v16, %v184_v18 }
  0x93   : > { %v212_v21 = vadd.f32 %v207_v17, %v200_v20  ;;  %v211_v22 = vadd.f32 %v207_v17, %v199_v19 }
  0x94   : > { %v179_v23 = vpop.permute.xlu0 %178  ;;  %v203_v28 = vpop.permute.xlu1 %202 }
  0x95   : > { %v197_v24 = vmul.f32 %v190_v15, %v179_v23  ;;  %v198_v25 = vmul.f32 %v194_v16, %v179_v23  ;;  %v216_v26 = vmax.f32 %v212_v21, 0.0  ;;  %v215_v27 = vmax.f32 %v211_v22, 0.0 }
  0x97   : > { %v209_v29 = vadd.f32 %v203_v28, %v197_v24  ;;  %v210_v30 = vadd.f32 %v203_v28, %v198_v25  ;;  %274 = vmatprep.subr.mxu0 %v216_v26  ;;  %432 = vmatprep.subr.mxu1 %v216_v26 }
  0x98   : > { %275 = vmatpush1.msra.mxu0 %v215_v27  ;;  %434 = vmatpush1.msra.mxu1 %v215_v27 }
  0x99   : > { %v214_v31 = vmax.f32 %v210_v30, 0.0  ;;  %v213_v32 = vmax.f32 %v209_v29, 0.0  ;;  %v225_v33 = vpop.permute.xlu1 %224  ;;  %v220_v34 = vpop.permute.xlu0 %219 }
  0x9b   : > { %276 = vmatprep.subr.mxu0 %v214_v31  ;;  %433 = vmatprep.subr.mxu1 %v214_v31 }
  0x9c   : > { %277 = vmatpush1.msra.mxu0 %v213_v32  ;;  %435 = vmatpush1.msra.mxu1 %v213_v32 }
  0x9d   : > { %422 = vmatmul.mubr.msk.f32.vlgmr.msra.gmra.mxu0 %vm237_vm0, %v172_v5  ;;  %424 = vmatmul.mubr.msk.f32.vlgmr.msra.gmra.mxu1 %vm237_vm0, %v174_v8  ;;  %v230_v35 = vpop.permute.xlu1 %229  ;;  %v235_v42 = vpop.permute.xlu0 %234 }
  0x9e   : > { %316 = vmatprep.mubr.f32.mxu0 %v550_v4  ;;  %328 = vmatprep.mubr.f32.mxu1 %v550_v4 }
  0xa1   : > { %423 = vmatmul.mubr.msk.f32.gmra.mxu0 %vm237_vm0, %v173_v6  ;;  %425 = vmatmul.mubr.msk.f32.gmra.mxu1 %vm237_vm0, %v175_v9 }
 0x15d   : > { %v312_v36 = vpop.f32.mrf.mxu0  ;;  %v324_v37 = vpop.f32.mrf.mxu1 }
 0x15e   : > { %v313_v38 = vadd.f32 %v312_v36, %v220_v34  ;;  %v325_v39 = vadd.f32 %v324_v37, %v230_v35 }
 0x15f   : > { %v314_v40 = vpop.f32.mrf.mxu0  ;;  %v326_v41 = vpop.f32.mrf.mxu1 }
 0x160   : > { %335 = vst [vmem:[%s162_s24] sm:$0xff] %v313_v38  ;;  %339 = vst [vmem:[%s162_s24 + $0x20] sm:$0xff] %v325_v39  ;;  %v315_v43 = vadd.f32 %v314_v40, %v220_v34  ;;  %v327_v44 = vadd.f32 %v326_v41, %v230_v35 }
 0x161   : > { %v318_v45 = vpop.f32.mrf.mxu0  ;;  %v330_v46 = vpop.f32.mrf.mxu1 }
 0x162   : > { %336 = vst [vmem:[%s162_s24 + $0x8] sm:$0xff] %v315_v43  ;;  %340 = vst [vmem:[%s162_s24 + $0x28] sm:$0xff] %v327_v44  ;;  %v319_v47 = vadd.f32 %v318_v45, %v225_v33  ;;  %v331_v48 = vadd.f32 %v330_v46, %v235_v42 }
 0x163   : > { %v320_v49 = vpop.f32.mrf.mxu0  ;;  %v332_v50 = vpop.f32.mrf.mxu1 }
 0x164   : > { %337 = vst [vmem:[%s162_s24 + $0x10] sm:$0xff] %v319_v47  ;;  %341 = vst [vmem:[%s162_s24 + $0x30] sm:$0xff] %v331_v48  ;;  %v321_v51 = vadd.f32 %v320_v49, %v225_v33  ;;  %v333_v52 = vadd.f32 %v332_v50, %v235_v42 }
 0x166   : > { %338 = vst [vmem:[%s162_s24 + $0x18] sm:$0xff] %v321_v51  ;;  %342 = vst [vmem:[%s162_s24 + $0x38] sm:$0xff] %v333_v52 }
 0x167   : > { %499 = shalt.err (!%p496_p3)
}
 0x168   : > { %s500_s7 = scalar_lea.hbm %s655_s29, 1024  ;;  %s504_s10 = scalar_lea.hbm %s702_s3, 2048 }
 0x169   : > { %p501_p4 = scmp.ne.s32.totalorder %s655_s29, %s500_s7  ;;  %p505_p9 = scmp.lt.s32.totalorder %s655_s29, %s702_s3 }
 0x16a   : > { %p506_p10 = scmp.lt.s32.totalorder %s504_s10, %s500_s7 }
 0x16b   : > { %p502_p7 = pnand %p501_p4, %p614_p5 }
 0x16c   : > { %p507_p11 = por %p506_p10, %p505_p9 }
 0x16d   : > { %p503_p8 = pneg %p502_p7 }
 0x16f   : > { %p508_p12 = pnand %p507_p11, %p503_p8 }
 0x171   : > { %511 = shalt.err (!%p508_p12)
}
 0x172   : > { %s553_s19 = smov 256   ;;  %s554_s20 = smov 512  }
 0x173   : > { %s555_s24 = smov 16  }
 0x174   : > { %436 = dma.vmem_to_hbm [thread:$0]  (%p614_p5), %s650_s25, 1024, %s655_s29, %s659_s16, %s553_s19, %s554_s20, %s555_s24  }
 0x175 PF: > { %p442_p13 = scmp.ge.s32.totalorder %s546_s15, 2  ;;  %s372_s26 = sand.u32 1, %s534_s12  }
 0x176   : > { %s373_s27 = scalar_lea.sflag [#allocation3], %s372_s26 }
 0x177   : > { %p439_p0 = pnand %p442_p13, %p618_p6 }
 0x179   : > { %p440_p1 = pneg %p439_p0 }
 0x17b   : > { %529 = dma.done.wait (%p440_p1), %s373_s27, 1024  }
 0x17c   : > { %531 = vsyncadd (%p440_p1), %s373_s27, 4294966272  ;;  %p13_p2 = scmp.ge.s32.totalorder %s601_s18, 4   ;;  %s705_s12 = smov %s538_s13 }
 0x17d   : > { %s706_s13 = smov %s542_s14  ;;  %s707_s14 = smov %s612_s21 }
 0x17e   : > { %s708_s15 = smov %s601_s18  ;;  %15 = sbr.rel (!%p13_p2) target bundleno = 3 (0x3), region = 67 }
 0x183   :  { %378 = vsyncpa [#allocation3], 1 }
 0x184   :  { %380 = vsyncpa [#allocation3 + $0x1], 1 }

</bundles_post_ra>
